<compile_context>
chip_gen: v6e
topology: v6e:2x2x1
jax: 0.10.0
libtpu: 0.0.40
codegen_flags: <defaults>
</compile_context>

<pallas_src>
import jax
import jax.numpy as jnp
from jax.experimental import pallas as pl
from jax.experimental.pallas import tpu as pltpu


def _pgen_kernel(ctx_ref, hid_ref, emb_ref,
                 wa_ref, wh_ref, we_ref, bias_ref, out_ref):
    # ctx_ref: (TM, A), hid_ref: (TM, H), emb_ref: (TM, E)     [VMEM]
    # wa_ref: (1, A), wh_ref: (1, H), we_ref: (1, E)            [VMEM, resident]
    # bias_ref: (1,) f32                                        [SMEM]
    # out_ref: (TM, 1)
    s = jnp.sum((ctx_ref[...] * wa_ref[...]).astype(jnp.float32),
                axis=-1, keepdims=True)
    s = s + jnp.sum((hid_ref[...] * wh_ref[...]).astype(jnp.float32),
                    axis=-1, keepdims=True)
    s = s + jnp.sum((emb_ref[...] * we_ref[...]).astype(jnp.float32),
                    axis=-1, keepdims=True)
    s = s + bias_ref[0]
    out_ref[...] = jax.nn.sigmoid(s).astype(out_ref.dtype)


def _round_up(x: int, m: int) -> int:
    return ((x + m - 1) // m) * m


def _default_block_rows(total_features: int, dtype_bytes: int,
                        budget_bytes: int = 8 * 1024 * 1024) -> int:
    """Largest row tile whose double-buffered activation tiles fit the budget.

    ~8 MiB keeps the kernel inside the default scoped-VMEM limit on all of
    v5e / v6e / v7x while still giving ~8K-row tiles for D_total=128 f32.
    """
    rows = budget_bytes // (2 * total_features * dtype_bytes)
    rows = (rows // 8) * 8
    return max(8, min(8192, rows))


def generation_probability(attention_context, decoder_hiddens, target_embeddings,
                           w_attention, w_hs, w_emb, bias, *, block_rows=None):
    """Pallas implementation of GenerationProbability.forward.

    attention_context: (B, L, A)
    decoder_hiddens:   (B, L, H)
    target_embeddings: (B, L, E)
    w_attention: (A,)  w_hs: (H,)  w_emb: (E,)  bias: (1,)
    returns: (B, L, 1)
    """
    B, L, A = attention_context.shape
    H = decoder_hiddens.shape[-1]
    E = target_embeddings.shape[-1]
    M = B * L
    dtype = attention_context.dtype
    dtype_bytes = jnp.dtype(dtype).itemsize

    # Metadata-only reshapes (no HBM copies).
    ctx2 = attention_context.reshape(M, A)
    hid2 = decoder_hiddens.reshape(M, H)
    emb2 = target_embeddings.reshape(M, E)

    if block_rows is None:
        block_rows = _default_block_rows(A + H + E, dtype_bytes)
    # Row tile: multiple of 8 sublanes, clamped to the (rounded-up) problem size.
    tm = min(block_rows, _round_up(M, 8))
    tm = max(8, (tm // 8) * 8)

    grid = (pl.cdiv(M, tm),)

    out = pl.pallas_call(
        _pgen_kernel,
        out_shape=jax.ShapeDtypeStruct((M, 1), dtype),
        grid=grid,
        in_specs=[
            pl.BlockSpec((tm, A), lambda i: (i, 0)),
            pl.BlockSpec((tm, H), lambda i: (i, 0)),
            pl.BlockSpec((tm, E), lambda i: (i, 0)),
            # Weights: constant index_map -> stay resident in VMEM.
            pl.BlockSpec((1, A), lambda i: (0, 0)),
            pl.BlockSpec((1, H), lambda i: (0, 0)),
            pl.BlockSpec((1, E), lambda i: (0, 0)),
            # Scalar bias in SMEM.
            pl.BlockSpec(memory_space=pltpu.SMEM),
        ],
        out_specs=pl.BlockSpec((tm, 1), lambda i: (i, 0)),
        compiler_params=pltpu.CompilerParams(
            dimension_semantics=("parallel",)),
    )(
        ctx2, hid2, emb2,
        w_attention.reshape(1, A).astype(dtype),
        w_hs.reshape(1, H).astype(dtype),
        w_emb.reshape(1, E).astype(dtype),
        bias.reshape(1).astype(jnp.float32),
    )
    return out.reshape(B, L, 1)


def _reference(ctx, hid, emb, wa, wh, we, bias):
    # Pure-JAX reference mirroring the PyTorch forward.
    p = (ctx @ wa[:, None]) + (hid @ wh[:, None]) + (emb @ we[:, None]) + bias
    return jax.nn.sigmoid(p)


def _make_inputs(key, B, L, attention_size, hidden_size, embedding_size):
    stdev = 1.0 / jnp.sqrt(100.0)
    k = jax.random.split(key, 7)
    attention_context = jax.random.normal(k[0], (B, L, attention_size), jnp.float32)
    decoder_hiddens = jax.random.normal(k[1], (B, L, hidden_size), jnp.float32)
    target_embeddings = jax.random.normal(k[2], (B, L, embedding_size), jnp.float32)
    # nn.Linear-style uniform init; bias uniform(-stdev, stdev).
    w_attention = jax.random.uniform(
        k[3], (attention_size,), jnp.float32,
        -1.0 / jnp.sqrt(attention_size), 1.0 / jnp.sqrt(attention_size))
    w_hs = jax.random.uniform(
        k[4], (hidden_size,), jnp.float32,
        -1.0 / jnp.sqrt(hidden_size), 1.0 / jnp.sqrt(hidden_size))
    w_emb = jax.random.uniform(
        k[5], (embedding_size,), jnp.float32,
        -1.0 / jnp.sqrt(embedding_size), 1.0 / jnp.sqrt(embedding_size))
    bias = jax.random.uniform(k[6], (1,), jnp.float32, -stdev, stdev)
    return (attention_context, decoder_hiddens, target_embeddings,
            w_attention, w_hs, w_emb, bias)


if __name__ == "__main__":
    embedding_size, hidden_size, attention_size = 32, 32, 64
    key = jax.random.PRNGKey(0)
    k1, k2 = jax.random.split(key)

    # Small shapes consistent with the module's forward (single-tile path).
    B, L = 2, 8
    args = _make_inputs(k1, B, L, attention_size, hidden_size, embedding_size)
    out = generation_probability(*args)
    out = jax.block_until_ready(out)
    ref = _reference(*args)
    assert out.shape == (B, L, 1)
    assert jnp.allclose(out, ref, atol=1e-5, rtol=1e-5)

    # Second check exercising the multi-tile grid + ragged tail path
    # (M = 3*345 = 1035, not a multiple of the 256-row tile).
    B2, L2 = 3, 345
    args2 = _make_inputs(k2, B2, L2, attention_size, hidden_size, embedding_size)
    out2 = generation_probability(*args2, block_rows=256)
    out2 = jax.block_until_ready(out2)
    ref2 = _reference(*args2)
    assert out2.shape == (B2, L2, 1)
    assert jnp.allclose(out2, ref2, atol=1e-5, rtol=1e-5)

    print("KERNEL_OK")
</pallas_src>

<mosaic_0001>
module attributes {stable_mosaic.version = 11 : i64} {
  func.func @_pgen_kernel(%arg0: i32, %arg1: memref<16x64xf32, #tpu.memory_space<vmem>>, %arg2: memref<16x32xf32, #tpu.memory_space<vmem>>, %arg3: memref<16x32xf32, #tpu.memory_space<vmem>>, %arg4: memref<1x64xf32, #tpu.memory_space<vmem>>, %arg5: memref<1x32xf32, #tpu.memory_space<vmem>>, %arg6: memref<1x32xf32, #tpu.memory_space<vmem>>, %arg7: memref<1xf32, #tpu.memory_space<smem>>, %arg8: memref<16x1xf32, #tpu.memory_space<vmem>>) attributes {dimension_semantics = [#tpu.dimension_semantics<parallel>], iteration_bounds = array<i64: 1>, scalar_prefetch = 0 : i64, scratch_operands = 0 : i64, tpu.core_type = #tpu.core_type<tc>, window_params = [{transform_indices = @transform_0, window_bounds = array<i64: 16, 64>}, {transform_indices = @transform_1, window_bounds = array<i64: 16, 32>}, {transform_indices = @transform_2, window_bounds = array<i64: 16, 32>}, {pipeline_mode = #tpu.pipeline_mode<synchronous>, transform_indices = @transform_3, window_bounds = array<i64: 1, 64>}, {pipeline_mode = #tpu.pipeline_mode<synchronous>, transform_indices = @transform_4, window_bounds = array<i64: 1, 32>}, {pipeline_mode = #tpu.pipeline_mode<synchronous>, transform_indices = @transform_5, window_bounds = array<i64: 1, 32>}, {transform_indices = @transform_6, window_bounds = array<i64: 1>}, {transform_indices = @transform_7, window_bounds = array<i64: 16, 1>}]} {
    %c0 = arith.constant 0 : index
    %c0_0 = arith.constant 0 : index
    %0 = vector.load %arg1[%c0, %c0_0] : memref<16x64xf32, #tpu.memory_space<vmem>>, vector<16x64xf32>
    %c0_1 = arith.constant 0 : index
    %c0_2 = arith.constant 0 : index
    %1 = vector.load %arg4[%c0_1, %c0_2] : memref<1x64xf32, #tpu.memory_space<vmem>>, vector<1x64xf32>
    %2 = vector.broadcast %1 : vector<1x64xf32> to vector<16x64xf32>
    %3 = arith.mulf %0, %2 : vector<16x64xf32>
    %cst = arith.constant dense<0.000000e+00> : vector<16xf32>
    %4 = vector.multi_reduction <add>, %3, %cst [1] : vector<16x64xf32> to vector<16xf32>
    %5 = vector.shape_cast %4 : vector<16xf32> to vector<16x1xf32>
    %c0_3 = arith.constant 0 : index
    %c0_4 = arith.constant 0 : index
    %6 = vector.load %arg2[%c0_3, %c0_4] : memref<16x32xf32, #tpu.memory_space<vmem>>, vector<16x32xf32>
    %c0_5 = arith.constant 0 : index
    %c0_6 = arith.constant 0 : index
    %7 = vector.load %arg5[%c0_5, %c0_6] : memref<1x32xf32, #tpu.memory_space<vmem>>, vector<1x32xf32>
    %8 = vector.broadcast %7 : vector<1x32xf32> to vector<16x32xf32>
    %9 = arith.mulf %6, %8 : vector<16x32xf32>
    %cst_7 = arith.constant dense<0.000000e+00> : vector<16xf32>
    %10 = vector.multi_reduction <add>, %9, %cst_7 [1] : vector<16x32xf32> to vector<16xf32>
    %11 = vector.shape_cast %10 : vector<16xf32> to vector<16x1xf32>
    %12 = arith.addf %5, %11 : vector<16x1xf32>
    %c0_8 = arith.constant 0 : index
    %c0_9 = arith.constant 0 : index
    %13 = vector.load %arg3[%c0_8, %c0_9] : memref<16x32xf32, #tpu.memory_space<vmem>>, vector<16x32xf32>
    %c0_10 = arith.constant 0 : index
    %c0_11 = arith.constant 0 : index
    %14 = vector.load %arg6[%c0_10, %c0_11] : memref<1x32xf32, #tpu.memory_space<vmem>>, vector<1x32xf32>
    %15 = vector.broadcast %14 : vector<1x32xf32> to vector<16x32xf32>
    %16 = arith.mulf %13, %15 : vector<16x32xf32>
    %cst_12 = arith.constant dense<0.000000e+00> : vector<16xf32>
    %17 = vector.multi_reduction <add>, %16, %cst_12 [1] : vector<16x32xf32> to vector<16xf32>
    %18 = vector.shape_cast %17 : vector<16xf32> to vector<16x1xf32>
    %19 = arith.addf %12, %18 : vector<16x1xf32>
    %c0_13 = arith.constant 0 : index
    %20 = memref.load %arg7[%c0_13] : memref<1xf32, #tpu.memory_space<smem>>
    %21 = vector.broadcast %20 : f32 to vector<16x1xf32>
    %22 = arith.addf %19, %21 : vector<16x1xf32>
    %23 = arith.negf %22 : vector<16x1xf32>
    %24 = math.exp %23 : vector<16x1xf32>
    %cst_14 = arith.constant 1.000000e+00 : f32
    %25 = vector.broadcast %cst_14 : f32 to vector<16x1xf32>
    %26 = arith.addf %25, %24 : vector<16x1xf32>
    %27 = arith.divf %25, %26 : vector<16x1xf32>
    %c0_15 = arith.constant 0 : index
    %c0_16 = arith.constant 0 : index
    %28 = vector.load %arg8[%c0_15, %c0_16] : memref<16x1xf32, #tpu.memory_space<vmem>>, vector<16x1xf32>
    tpu.vector_store %arg8[%c0_15, %c0_16], %27 {strides = array<i32>} : memref<16x1xf32, #tpu.memory_space<vmem>>, vector<16x1xf32>,
    return
  }
  func.func @transform_0(%arg0: i32) -> (i32, i32) {
    %c0_i32 = arith.constant 0 : i32
    %c0_i32_0 = arith.constant 0 : i32
    return %arg0, %c0_i32 : i32, i32
  }
  func.func @transform_1(%arg0: i32) -> (i32, i32) {
    %c0_i32 = arith.constant 0 : i32
    %c0_i32_0 = arith.constant 0 : i32
    return %arg0, %c0_i32 : i32, i32
  }
  func.func @transform_2(%arg0: i32) -> (i32, i32) {
    %c0_i32 = arith.constant 0 : i32
    %c0_i32_0 = arith.constant 0 : i32
    return %arg0, %c0_i32 : i32, i32
  }
  func.func @transform_3(%arg0: i32) -> (i32, i32) {
    %c0_i32 = arith.constant 0 : i32
    %c0_i32_0 = arith.constant 0 : i32
    %c0_i32_1 = arith.constant 0 : i32
    return %c0_i32, %c0_i32_0 : i32, i32
  }
  func.func @transform_4(%arg0: i32) -> (i32, i32) {
    %c0_i32 = arith.constant 0 : i32
    %c0_i32_0 = arith.constant 0 : i32
    %c0_i32_1 = arith.constant 0 : i32
    return %c0_i32, %c0_i32_0 : i32, i32
  }
  func.func @transform_5(%arg0: i32) -> (i32, i32) {
    %c0_i32 = arith.constant 0 : i32
    %c0_i32_0 = arith.constant 0 : i32
    %c0_i32_1 = arith.constant 0 : i32
    return %c0_i32, %c0_i32_0 : i32, i32
  }
  func.func @transform_6(%arg0: i32) -> i32 {
    %c0_i32 = arith.constant 0 : i32
    %c0_i32_0 = arith.constant 0 : i32
    return %c0_i32 : i32
  }
  func.func @transform_7(%arg0: i32) -> (i32, i32) {
    %c0_i32 = arith.constant 0 : i32
    %c0_i32_0 = arith.constant 0 : i32
    return %arg0, %c0_i32 : i32, i32
  }
}

</mosaic_0001>

<bundles_post_ra>
// kernel: tpu_custom_call.1
= control target key start
LH: loop header
LB: loop body
LE: loop exit
PB: predicated region body
PF: predicated region fallthrough
CT: control target
= control target key end

     0   :  { %13 = vsyncpa [#allocation4], 0  ;;  %s308_s0 = inlined_call_operand.hbm [shape: f32[16,64], index: 0, kind: input, shape index: {}]   ;;  %s309_s1 = inlined_call_operand.hbm [shape: f32[16,32], index: 1, kind: input, shape index: {}]   ;;  %s310_s2 = inlined_call_operand.hbm [shape: f32[16,32], index: 2, kind: input, shape index: {}]   ;;  %s311_s3 = inlined_call_operand.vmem [shape: f32[1,64], index: 3, kind: input, shape index: {}]   ;;  %s312_s4 = inlined_call_operand.vmem [shape: f32[1,32], index: 4, kind: input, shape index: {}]   ;;  %s313_s5 = inlined_call_operand.vmem [shape: f32[1,32], index: 5, kind: input, shape index: {}]   ;;  %s314_s6 = inlined_call_operand.<no memory space> [shape: f32[1], index: 6, kind: input, shape index: {}]   ;;  %s315_s7 = inlined_call_operand.vmem [shape: f32[16,1], index: 7, kind: output, shape index: {}]  }
   0x1   :  { %14 = vsyncpa [#allocation6], 0  ;;  %s232_s24 = smov [#allocation5]   ;;  %s233_s26 = smov [#allocation3]  }
   0x2   :  { %s32_s25 = sshll.u32 %s232_s24, 4  ;;  %s20_s27 = sshll.u32 %s233_s26, 4  ;;  %s33_s25 = int_to_ptr.vmem [resolvable:$true] %s32_s25  ;;  %s21_s27 = int_to_ptr.vmem [resolvable:$true] %s20_s27 }
   0x3   :  { %s176_s28 = scalar_lea.vmem %s33_s25, 256  ;;  %p181_p1 = scmp.lt.s32.totalorder %s33_s25, %s33_s25 }
   0x4   :  { %p177_p0 = scmp.ne.s32.totalorder %s33_s25, %s176_s28  ;;  %p182_p2 = scmp.lt.s32.totalorder %s176_s28, %s176_s28 }
   0x6   :  { %p183_p3 = por %p182_p2, %p181_p1 }
   0x8   :  { %p184_p4 = pnand %p183_p3, %p177_p0 }
   0xa   :  { %187 = shalt.err (!%p184_p4)
}
   0xb   :  { %s234_s29 = smov 128   ;;  %s235_s30 = smov 8  }
   0xc   :  { %38 = dma.hbm_to_vmem [thread:$0]  %s309_s1, 256, %s33_s25, [#allocation6], %s234_s29, %s234_s29, %s235_s30  }
   0xd   :  { %s196_s10 = scalar_lea.vmem %s21_s27, 256  ;;  %p201_p6 = scmp.lt.s32.totalorder %s21_s27, %s21_s27 }
   0xe   :  { %p197_p5 = scmp.ne.s32.totalorder %s21_s27, %s196_s10  ;;  %p202_p7 = scmp.lt.s32.totalorder %s196_s10, %s196_s10 }
  0x10   :  { %p203_p8 = por %p202_p7, %p201_p6 }
  0x12   :  { %p204_p9 = pnand %p203_p8, %p197_p5 }
  0x14   :  { %207 = shalt.err (!%p204_p9)
}
  0x15   :  { %26 = dma.hbm_to_vmem [thread:$0]  %s308_s0, 256, %s21_s27, [#allocation4], %s234_s29, %s234_s29, %s235_s30  }
  0x16   :  { %s236_s13 = smov [#allocation7]  }
  0x17   :  { %s44_s14 = sshll.u32 %s236_s13, 4  ;;  %s45_s14 = int_to_ptr.vmem [resolvable:$true] %s44_s14 }
  0x18   :  { %s216_s15 = scalar_lea.vmem %s45_s14, 256  ;;  %p221_p11 = scmp.lt.s32.totalorder %s45_s14, %s45_s14 }
  0x19   :  { %p217_p10 = scmp.ne.s32.totalorder %s45_s14, %s216_s15  ;;  %p222_p12 = scmp.lt.s32.totalorder %s216_s15, %s216_s15 }
  0x1b   :  { %p223_p13 = por %p222_p12, %p221_p11 }
  0x1d   :  { %p224_p0 = pnand %p223_p13, %p217_p10 }
  0x1f   :  { %227 = shalt.err (!%p224_p0)
}
  0x20   :  { %50 = dma.hbm_to_vmem [thread:$0]  %s310_s2, 256, %s45_s14, [#allocation6], %s234_s29, %s234_s29, %s235_s30  }
  0x21   :  { %228 = dma.done.wait [#allocation4], 256  }
  0x22   :  { %229 = vsyncadd [#allocation4], 4294967040 }
  0x23   :  { %230 = dma.done.wait [#allocation6], 512  }
  0x24   :  { %231 = vsyncadd [#allocation6], 4294966784  ;;  %v86_v0 = vld [vmem:[#allocation5] sm:$0xff]  ;;  %v151_v1 = vld [vmem:[%s312_s4] ss:$0 sm:$0xff]  ;;  %vm97_vm0 = vcmask 261120   ;;  %v126_v27 = vstv %s314_s6 }
  0x25   :  { %v68_v2 = vld [vmem:[#allocation3] sm:$0xff]  ;;  %v95_v3 = vmul.f32 %v151_v1, %v86_v0  ;;  %vm79_vm1 = vcmask 523264   ;;  %v87_v5 = vld [vmem:[#allocation5 + $0x8] sm:$0xff]  ;;  %v69_v6 = vld [vmem:[#allocation3 + $0x8] sm:$0xff]  ;;  %vm141_vm2 = vcmask 7168  }
  0x26   :  { %v150_v4 = vld [vmem:[%s311_s3] ss:$0 sm:$0xff]  ;;  %v96_v8 = vmul.f32 %v151_v1, %v87_v5  ;;  %v107_v10 = vld [vmem:[#allocation7 + $0x8] sm:$0xff] }
  0x27   :  { %v77_v7 = vmul.f32 %v150_v4, %v68_v2  ;;  %v78_v9 = vmul.f32 %v150_v4, %v69_v6  ;;  %v152_v11 = vld [vmem:[%s313_s5] ss:$0 sm:$0xff]  ;;  %v98_v12 = vsel %vm97_vm0, %v95_v3, 0.0 }
  0x28   :  { %v106_v13 = vld [vmem:[#allocation7] sm:$0xff]  ;;  %99 = vadd.xlane.f32.xlu1 %v98_v12  ;;  %v101_v15 = vsel %vm97_vm0, %v96_v8, 0.0  ;;  %v116_v16 = vmul.f32 %v152_v11, %v107_v10 }
  0x29   :  { %v80_v14 = vsel %vm79_vm1, %v77_v7, 0.0  ;;  %v83_v17 = vsel %vm79_vm1, %v78_v9, 0.0  ;;  %v115_v18 = vmul.f32 %v152_v11, %v106_v13 }
  0x2a   :  { %81 = vadd.xlane.f32.xlu0 %v80_v14  ;;  %v120_v19 = vsel %vm97_vm0, %v116_v16, 0.0 }
  0x2b   :  { %v117_v20 = vsel %vm97_vm0, %v115_v18, 0.0 }
  0x2c   :  { %102 = vadd.xlane.f32.xlu1 %v101_v15 }
  0x2e   :  { %84 = vadd.xlane.f32.xlu0 %v83_v17 }
  0x30   :  { %121 = vadd.xlane.f32.xlu1 %v120_v19 }
  0x32   :  { %118 = vadd.xlane.f32.xlu0 %v117_v20 }
  0xb1   :  { %v100_v21 = vpop.xlane.xlu1 %99 }
  0xb3   :  { %v82_v22 = vpop.xlane.xlu0 %81 }
  0xb4   :  { %v104_v26 = vadd.f32 %v100_v21, %v82_v22 }
  0xb5   :  { %v103_v23 = vpop.xlane.xlu1 %102 }
  0xb7   :  { %v85_v24 = vpop.xlane.xlu0 %84 }
  0xb8   :  { %v105_v25 = vadd.f32 %v103_v23, %v85_v24 }
  0xb9   :  { %v122_v28 = vpop.xlane.xlu1 %121 }
  0xba   :  { %v124_v29 = vadd.f32 %v122_v28, %v105_v25 }
  0xbb   :  { %v119_v30 = vpop.xlane.xlu0 %118 }
  0xbc   :  { %v123_v31 = vadd.f32 %v119_v30, %v104_v26  ;;  %v128_v32 = vadd.f32 %v126_v27, %v124_v29 }
  0xbe   :  { %v127_v33 = vadd.f32 %v126_v27, %v123_v31  ;;  %v154_v34 = vmul.f32 -1.442695, %v128_v32 }
  0xc0   :  { %v153_v35 = vmul.f32 -1.442695, %v127_v33  ;;  %160 = vpow2.f32 %v154_v34 }
  0xc2   :  { %162 = vpow2.f32 %v153_v35 }
  0xcd   :  { %v161_v36 = vpop.eup %160 }
  0xce   :  { %v136_v38 = vadd.f32 1.0, %v161_v36 }
  0xcf   :  { %v163_v37 = vpop.eup %162 }
  0xd0   :  { %v135_v39 = vadd.f32 1.0, %v163_v37  ;;  %164 = vrcp.f32 %v136_v38 }
  0xd2   :  { %166 = vrcp.f32 %v135_v39 }
  0xdd   :  { %v165_v40 = vpop.eup %164 }
  0xde   :  { %143 = vst.msk [vmem:[%s315_s7 + $0x8] sm:$0xff] %vm141_vm2, %v165_v40 }
  0xdf   :  { %v167_v41 = vpop.eup %166 }
  0xe0   :  { %142 = vst.msk [vmem:[%s315_s7] sm:$0xff] %vm141_vm2, %v167_v41 }
  0xe1   :  { %148 = vsyncpa [#allocation4], 1 }
  0xe2   :  { %149 = vsyncpa [#allocation6], 1 }

</bundles_post_ra>
